<compile_context>
chip_gen: v5e
topology: v5e:2x2
jax: 0.10.0
libtpu: 0.0.40
codegen_flags: <defaults>
</compile_context>

<pallas_src>
import functools

import jax
import jax.numpy as jnp
from jax.experimental import pallas as pl
from jax.experimental.pallas import tpu as pltpu

_LANES = 128
_SUBLANES = 8


def _quadruplet_kernel(a_ref, p_ref, n1_ref, n2_ref, out_ref, *,
                       weight, margin_pos, margin_neg, n_rows,
                       tiles_per_core, metric):
    c = pl.program_id(0)          # core-split axis ("parallel")
    i = pl.program_id(1)          # batch-tile axis ("arbitrary", accumulator)
    tile = c * tiles_per_core + i
    block_rows = a_ref.shape[0]

    @pl.when(i == 0)
    def _init():
        out_ref[...] = jnp.zeros_like(out_ref)

    a = a_ref[...].astype(jnp.float32)
    p = p_ref[...].astype(jnp.float32)
    n1 = n1_ref[...].astype(jnp.float32)
    n2 = n2_ref[...].astype(jnp.float32)

    def elem(d):  # per-element metric (reduction='none')
        return jnp.abs(d) if metric == "L1" else d * d

    d_pos1 = jnp.mean(elem(a - p), axis=1, keepdims=True)      # (TB, 1)
    d_pos2 = jnp.mean(elem(n1 - n2), axis=1, keepdims=True)    # (TB, 1)
    mid = 0.5 * ((a - n1) + (p - n2))                          # == (a+p)/2 - (n1+n2)/2
    d_neg = jnp.mean(elem(mid), axis=1, keepdims=True)         # (TB, 1)

    # Mask rows that fall past the true batch (partial / clamped OOB tiles).
    row = tile * block_rows + jax.lax.broadcasted_iota(
        jnp.int32, (block_rows, 1), 0)
    valid = row < n_rows
    zero = jnp.zeros_like(d_pos1)

    loss_rows = (0.5 * jnp.maximum(d_pos1, margin_pos)
                 + 0.5 * jnp.maximum(d_pos2, margin_pos)
                 - jnp.minimum(d_neg, margin_neg))
    loss_rows = jnp.where(valid, loss_rows, zero)
    dpos_rows = jnp.where(valid, d_pos1 + d_pos2, zero)
    dneg_rows = jnp.where(valid, d_neg, zero)

    inv_b = 1.0 / float(n_rows)
    s_loss = jnp.sum(loss_rows) * inv_b
    s_dpos = jnp.sum(dpos_rows) * (0.5 * inv_b)
    s_dneg = jnp.sum(dneg_rows) * inv_b

    # Lane-dense accumulation: lane0 = weight*loss, lane1 = loss,
    # lane2 = d_pos, lane3 = d_neg (already scaled, so no finalize needed).
    lane = jax.lax.broadcasted_iota(jnp.int32, (1, _SUBLANES, _LANES), 2)
    upd = jnp.where(lane == 0, weight * s_loss,
          jnp.where(lane == 1, s_loss,
          jnp.where(lane == 2, s_dpos,
          jnp.where(lane == 3, s_dneg, 0.0))))
    out_ref[...] += upd.astype(jnp.float32)


def _choose_block_rows(batch, feat, itemsize, requested=None,
                       vmem_target=32 << 20):
    """Largest batch tile whose double-buffered working set fits the target."""
    if requested is None:
        cap = vmem_target // (8 * feat * itemsize)     # 4 inputs x 2 buffers
        requested = max(_SUBLANES, (cap // _SUBLANES) * _SUBLANES)
    if requested >= batch:
        return batch                                    # single full block
    return max(_SUBLANES, (requested // _SUBLANES) * _SUBLANES)


def quadruplet_loss(anchor, pos, neg1, neg2, *, weight=1.0, margin_pos=0.1,
                    margin_neg=1.0, metric_type="L2", block_rows=None,
                    num_core_splits=2):
    """Pallas implementation of QuadrupletLoss.forward."""
    B, D = anchor.shape
    itemsize = jnp.dtype(anchor.dtype).itemsize
    tb = _choose_block_rows(B, D, itemsize, block_rows)
    num_tiles = (B + tb - 1) // tb
    nc = num_core_splits if num_tiles >= num_core_splits else 1
    tiles_per_core = (num_tiles + nc - 1) // nc
    last_tile = num_tiles - 1

    kernel = functools.partial(
        _quadruplet_kernel,
        weight=float(weight),
        margin_pos=float(margin_pos),
        margin_neg=float(margin_neg),
        n_rows=B,
        tiles_per_core=tiles_per_core,
        metric=metric_type,
    )

    def in_map(c, i):
        # Clamp to the last real tile; surplus slots are fully masked in-kernel.
        return (jnp.minimum(c * tiles_per_core + i, last_tile), 0)

    in_spec = pl.BlockSpec((tb, D), in_map)
    out_spec = pl.BlockSpec((1, _SUBLANES, _LANES), lambda c, i: (c, 0, 0))

    # Double-buffered input working set + resident output, with headroom.
    vmem_needed = 8 * tb * D * itemsize + 2 * nc * _SUBLANES * _LANES * 4
    vmem_limit = min(max(int(vmem_needed * 3 // 2), 32 << 20), 48 << 20)

    out = pl.pallas_call(
        kernel,
        grid=(nc, tiles_per_core),
        in_specs=[in_spec, in_spec, in_spec, in_spec],
        out_specs=out_spec,
        out_shape=jax.ShapeDtypeStruct((nc, _SUBLANES, _LANES), jnp.float32),
        compiler_params=pltpu.CompilerParams(
            dimension_semantics=("parallel", "arbitrary"),
            vmem_limit_bytes=vmem_limit),
        cost_estimate=pl.CostEstimate(
            flops=12 * B * D,
            transcendentals=0,
            bytes_accessed=4 * B * D * itemsize + nc * _SUBLANES * _LANES * 4),
    )(anchor, pos, neg1, neg2)

    totals = jnp.sum(out[:, 0, :], axis=0)      # combine per-core partials
    weighted_loss = totals[0]
    loss_cvg = totals[1]
    d_pos = totals[2]
    d_neg = totals[3]
    return weighted_loss, (loss_cvg, d_pos, d_neg)


def _reference(anchor, pos, neg1, neg2, *, weight=1.0, margin_pos=0.1,
               margin_neg=1.0, metric_type="L2"):
    def m(x, y):
        d = x - y
        return jnp.abs(d) if metric_type == "L1" else d * d
    d_pos1 = jnp.mean(m(anchor, pos), axis=1)
    d_pos2 = jnp.mean(m(neg1, neg2), axis=1)
    d_neg = jnp.mean(m((anchor + pos) / 2, (neg1 + neg2) / 2), axis=1)
    loss_cvg = (0.5 * jnp.maximum(d_pos1, margin_pos)
                + 0.5 * jnp.maximum(d_pos2, margin_pos)
                - jnp.minimum(d_neg, margin_neg))
    d_pos = (d_pos1.mean() + d_pos2.mean()) / 2
    return weight * loss_cvg.mean(), (loss_cvg.mean(), d_pos, d_neg.mean())


def _check(got, want, tag):
    gw, (gl, gp, gn) = got
    ww, (wl, wp, wn) = want
    for name, g, w in (("weighted", gw, ww), ("loss_cvg", gl, wl),
                       ("d_pos", gp, wp), ("d_neg", gn, wn)):
        assert jnp.allclose(g, w, atol=1e-5, rtol=1e-5), (tag, name, g, w)


if __name__ == "__main__":
    # TODO(synk): runtime-tensor margins (torch.Tensor([m]).to(device)) are
    # baked as compile-time scalars; semantics of the forward are unchanged.
    key = jax.random.PRNGKey(0)
    ka, kp, kn1, kn2 = jax.random.split(key, 4)

    # Case 1: B not a multiple of the tile -> exercises the tiled grid, the
    # 2-way core split and the row masking of partial / surplus tiles.
    B, D = 20, 128
    anchor = jax.random.normal(ka, (B, D), dtype=jnp.float32)
    pos = anchor + 0.05 * jax.random.normal(kp, (B, D), dtype=jnp.float32)
    neg1 = jax.random.normal(kn1, (B, D), dtype=jnp.float32)
    neg2 = neg1 + 0.05 * jax.random.normal(kn2, (B, D), dtype=jnp.float32)

    got1 = quadruplet_loss(anchor, pos, neg1, neg2, block_rows=8)
    jax.block_until_ready(got1)
    _check(got1, _reference(anchor, pos, neg1, neg2), "tiled-L2")

    # Case 2: default tiling (single block), plus the L1 metric path.
    B2, D2 = 8, 256
    k2 = jax.random.split(jax.random.PRNGKey(1), 4)
    a2 = jax.random.normal(k2[0], (B2, D2), dtype=jnp.float32)
    p2 = a2 + 0.1 * jax.random.normal(k2[1], (B2, D2), dtype=jnp.float32)
    m1 = jax.random.normal(k2[2], (B2, D2), dtype=jnp.float32)
    m2 = m1 + 0.1 * jax.random.normal(k2[3], (B2, D2), dtype=jnp.float32)

    got2 = quadruplet_loss(a2, p2, m1, m2, weight=2.0, margin_pos=0.2,
                           margin_neg=0.5)
    jax.block_until_ready(got2)
    _check(got2, _reference(a2, p2, m1, m2, weight=2.0, margin_pos=0.2,
                            margin_neg=0.5), "default-L2")

    got3 = quadruplet_loss(a2, p2, m1, m2, metric_type="L1", block_rows=8)
    jax.block_until_ready(got3)
    _check(got3, _reference(a2, p2, m1, m2, metric_type="L1"), "L1")

    print("KERNEL_OK")
</pallas_src>

<mosaic_0001>
module attributes {stable_mosaic.version = 11 : i64} {
  func.func @_quadruplet_kernel(%arg0: i32, %arg1: i32, %arg2: memref<8x128xf32, #tpu.memory_space<vmem>>, %arg3: memref<8x128xf32, #tpu.memory_space<vmem>>, %arg4: memref<8x128xf32, #tpu.memory_space<vmem>>, %arg5: memref<8x128xf32, #tpu.memory_space<vmem>>, %arg6: memref<1x8x128xf32, #tpu.memory_space<vmem>>) attributes {dimension_semantics = [#tpu.dimension_semantics<parallel>, #tpu.dimension_semantics<arbitrary>], iteration_bounds = array<i64: 2, 2>, scalar_prefetch = 0 : i64, scratch_operands = 0 : i64, tpu.core_type = #tpu.core_type<tc>, window_params = [{transform_indices = @transform_0, window_bounds = array<i64: 8, 128>}, {transform_indices = @transform_1, window_bounds = array<i64: 8, 128>}, {transform_indices = @transform_2, window_bounds = array<i64: 8, 128>}, {transform_indices = @transform_3, window_bounds = array<i64: 8, 128>}, {transform_indices = @transform_4, window_bounds = array<i64: 1, 8, 128>}]} {
    %c2_i32 = arith.constant 2 : i32
    %0 = arith.muli %arg0, %c2_i32 : i32
    %1 = arith.addi %0, %arg1 : i32
    %c0_i32 = arith.constant 0 : i32
    %2 = arith.cmpi eq, %arg1, %c0_i32 : i32
    %3 = arith.extui %2 : i1 to i32
    %c0_i32_0 = arith.constant 0 : i32
    %4 = arith.cmpi ne, %3, %c0_i32_0 : i32
    scf.if %4 {
      %cst_36 = arith.constant 0.000000e+00 : f32
      %91 = vector.broadcast %cst_36 : f32 to vector<1x8x128xf32>
      %c0_37 = arith.constant 0 : index
      %c0_38 = arith.constant 0 : index
      %c0_39 = arith.constant 0 : index
      %92 = vector.load %arg6[%c0_37, %c0_38, %c0_39] : memref<1x8x128xf32, #tpu.memory_space<vmem>>, vector<1x8x128xf32>
      tpu.vector_store %arg6[%c0_37, %c0_38, %c0_39], %91 {strides = array<i32>} : memref<1x8x128xf32, #tpu.memory_space<vmem>>, vector<1x8x128xf32>,
    } else {
    }
    %c0 = arith.constant 0 : index
    %c0_1 = arith.constant 0 : index
    %5 = vector.load %arg2[%c0, %c0_1] : memref<8x128xf32, #tpu.memory_space<vmem>>, vector<8x128xf32>
    %c0_2 = arith.constant 0 : index
    %c0_3 = arith.constant 0 : index
    %6 = vector.load %arg3[%c0_2, %c0_3] : memref<8x128xf32, #tpu.memory_space<vmem>>, vector<8x128xf32>
    %c0_4 = arith.constant 0 : index
    %c0_5 = arith.constant 0 : index
    %7 = vector.load %arg4[%c0_4, %c0_5] : memref<8x128xf32, #tpu.memory_space<vmem>>, vector<8x128xf32>
    %c0_6 = arith.constant 0 : index
    %c0_7 = arith.constant 0 : index
    %8 = vector.load %arg5[%c0_6, %c0_7] : memref<8x128xf32, #tpu.memory_space<vmem>>, vector<8x128xf32>
    %9 = arith.subf %5, %6 : vector<8x128xf32>
    %10 = arith.mulf %9, %9 : vector<8x128xf32>
    %cst = arith.constant dense<0.000000e+00> : vector<8xf32>
    %11 = vector.multi_reduction <add>, %10, %cst [1] : vector<8x128xf32> to vector<8xf32>
    %12 = vector.shape_cast %11 : vector<8xf32> to vector<8x1xf32>
    %cst_8 = arith.constant 1.280000e+02 : f32
    %13 = vector.broadcast %cst_8 : f32 to vector<8x1xf32>
    %14 = arith.divf %12, %13 : vector<8x1xf32>
    %15 = arith.subf %7, %8 : vector<8x128xf32>
    %16 = arith.mulf %15, %15 : vector<8x128xf32>
    %cst_9 = arith.constant dense<0.000000e+00> : vector<8xf32>
    %17 = vector.multi_reduction <add>, %16, %cst_9 [1] : vector<8x128xf32> to vector<8xf32>
    %18 = vector.shape_cast %17 : vector<8xf32> to vector<8x1xf32>
    %cst_10 = arith.constant 1.280000e+02 : f32
    %19 = vector.broadcast %cst_10 : f32 to vector<8x1xf32>
    %20 = arith.divf %18, %19 : vector<8x1xf32>
    %21 = arith.subf %5, %7 : vector<8x128xf32>
    %22 = arith.subf %6, %8 : vector<8x128xf32>
    %23 = arith.addf %21, %22 : vector<8x128xf32>
    %cst_11 = arith.constant 5.000000e-01 : f32
    %24 = vector.broadcast %cst_11 : f32 to vector<8x128xf32>
    %25 = arith.mulf %24, %23 : vector<8x128xf32>
    %26 = arith.mulf %25, %25 : vector<8x128xf32>
    %cst_12 = arith.constant dense<0.000000e+00> : vector<8xf32>
    %27 = vector.multi_reduction <add>, %26, %cst_12 [1] : vector<8x128xf32> to vector<8xf32>
    %28 = vector.shape_cast %27 : vector<8xf32> to vector<8x1xf32>
    %cst_13 = arith.constant 1.280000e+02 : f32
    %29 = vector.broadcast %cst_13 : f32 to vector<8x1xf32>
    %30 = arith.divf %28, %29 : vector<8x1xf32>
    %c8_i32 = arith.constant 8 : i32
    %31 = arith.muli %1, %c8_i32 : i32
    %32 = tpu.iota {dimensions = array<i32: 0>} : vector<8x1xi32>
    %33 = vector.broadcast %31 : i32 to vector<8x1xi32>
    %34 = arith.addi %33, %32 : vector<8x1xi32>
    %c20_i32 = arith.constant 20 : i32
    %35 = vector.broadcast %c20_i32 : i32 to vector<8x1xi32>
    %36 = arith.cmpi slt, %34, %35 : vector<8x1xi32>
    %cst_14 = arith.constant 0.000000e+00 : f32
    %37 = vector.broadcast %cst_14 : f32 to vector<8x1xf32>
    %cst_15 = arith.constant 1.000000e-01 : f32
    %38 = vector.broadcast %cst_15 : f32 to vector<8x1xf32>
    %39 = arith.maximumf %14, %38 : vector<8x1xf32>
    %cst_16 = arith.constant 5.000000e-01 : f32
    %40 = vector.broadcast %cst_16 : f32 to vector<8x1xf32>
    %41 = arith.mulf %40, %39 : vector<8x1xf32>
    %cst_17 = arith.constant 1.000000e-01 : f32
    %42 = vector.broadcast %cst_17 : f32 to vector<8x1xf32>
    %43 = arith.maximumf %20, %42 : vector<8x1xf32>
    %cst_18 = arith.constant 5.000000e-01 : f32
    %44 = vector.broadcast %cst_18 : f32 to vector<8x1xf32>
    %45 = arith.mulf %44, %43 : vector<8x1xf32>
    %46 = arith.addf %41, %45 : vector<8x1xf32>
    %cst_19 = arith.constant 1.000000e+00 : f32
    %47 = vector.broadcast %cst_19 : f32 to vector<8x1xf32>
    %48 = arith.minimumf %30, %47 : vector<8x1xf32>
    %49 = arith.subf %46, %48 : vector<8x1xf32>
    %50 = arith.select %36, %49, %37 : vector<8x1xi1>, vector<8x1xf32>
    %51 = arith.addf %14, %20 : vector<8x1xf32>
    %52 = arith.select %36, %51, %37 : vector<8x1xi1>, vector<8x1xf32>
    %53 = arith.select %36, %30, %37 : vector<8x1xi1>, vector<8x1xf32>
    %54 = vector.shape_cast %50 : vector<8x1xf32> to vector<1x8x1xf32>
    %cst_20 = arith.constant dense<0.000000e+00> : vector<1xf32>
    %55 = vector.multi_reduction <add>, %54, %cst_20 [1, 2] : vector<1x8x1xf32> to vector<1xf32>
    %56 = vector.shape_cast %55 : vector<1xf32> to vector<1x1x1xf32>
    %57 = vector.extract %56[0, 0, 0] : f32 from vector<1x1x1xf32>
    %cst_21 = arith.constant 5.000000e-02 : f32
    %58 = arith.mulf %57, %cst_21 : f32
    %59 = vector.shape_cast %52 : vector<8x1xf32> to vector<1x8x1xf32>
    %cst_22 = arith.constant dense<0.000000e+00> : vector<1xf32>
    %60 = vector.multi_reduction <add>, %59, %cst_22 [1, 2] : vector<1x8x1xf32> to vector<1xf32>
    %61 = vector.shape_cast %60 : vector<1xf32> to vector<1x1x1xf32>
    %62 = vector.extract %61[0, 0, 0] : f32 from vector<1x1x1xf32>
    %cst_23 = arith.constant 2.500000e-02 : f32
    %63 = arith.mulf %62, %cst_23 : f32
    %64 = vector.shape_cast %53 : vector<8x1xf32> to vector<1x8x1xf32>
    %cst_24 = arith.constant dense<0.000000e+00> : vector<1xf32>
    %65 = vector.multi_reduction <add>, %64, %cst_24 [1, 2] : vector<1x8x1xf32> to vector<1xf32>
    %66 = vector.shape_cast %65 : vector<1xf32> to vector<1x1x1xf32>
    %67 = vector.extract %66[0, 0, 0] : f32 from vector<1x1x1xf32>
    %cst_25 = arith.constant 5.000000e-02 : f32
    %68 = arith.mulf %67, %cst_25 : f32
    %69 = tpu.iota {dimensions = array<i32: 2>} : vector<1x8x128xi32>
    %c0_i32_26 = arith.constant 0 : i32
    %70 = vector.broadcast %c0_i32_26 : i32 to vector<1x8x128xi32>
    %71 = arith.cmpi eq, %69, %70 : vector<1x8x128xi32>
    %cst_27 = arith.constant 1.000000e+00 : f32
    %72 = arith.mulf %cst_27, %58 : f32
    %c1_i32 = arith.constant 1 : i32
    %73 = vector.broadcast %c1_i32 : i32 to vector<1x8x128xi32>
    %74 = arith.cmpi eq, %69, %73 : vector<1x8x128xi32>
    %c2_i32_28 = arith.constant 2 : i32
    %75 = vector.broadcast %c2_i32_28 : i32 to vector<1x8x128xi32>
    %76 = arith.cmpi eq, %69, %75 : vector<1x8x128xi32>
    %c3_i32 = arith.constant 3 : i32
    %77 = vector.broadcast %c3_i32 : i32 to vector<1x8x128xi32>
    %78 = arith.cmpi eq, %69, %77 : vector<1x8x128xi32>
    %cst_29 = arith.constant 0.000000e+00 : f32
    %79 = vector.broadcast %68 : f32 to vector<1x8x128xf32>
    %80 = vector.broadcast %cst_29 : f32 to vector<1x8x128xf32>
    %81 = arith.select %78, %79, %80 : vector<1x8x128xi1>, vector<1x8x128xf32>
    %82 = vector.broadcast %63 : f32 to vector<1x8x128xf32>
    %83 = arith.select %76, %82, %81 : vector<1x8x128xi1>, vector<1x8x128xf32>
    %84 = vector.broadcast %58 : f32 to vector<1x8x128xf32>
    %85 = arith.select %74, %84, %83 : vector<1x8x128xi1>, vector<1x8x128xf32>
    %86 = vector.broadcast %72 : f32 to vector<1x8x128xf32>
    %87 = arith.select %71, %86, %85 : vector<1x8x128xi1>, vector<1x8x128xf32>
    %c0_30 = arith.constant 0 : index
    %c0_31 = arith.constant 0 : index
    %c0_32 = arith.constant 0 : index
    %88 = vector.load %arg6[%c0_30, %c0_31, %c0_32] : memref<1x8x128xf32, #tpu.memory_space<vmem>>, vector<1x8x128xf32>
    %89 = arith.addf %88, %87 : vector<1x8x128xf32>
    %c0_33 = arith.constant 0 : index
    %c0_34 = arith.constant 0 : index
    %c0_35 = arith.constant 0 : index
    %90 = vector.load %arg6[%c0_33, %c0_34, %c0_35] : memref<1x8x128xf32, #tpu.memory_space<vmem>>, vector<1x8x128xf32>
    tpu.vector_store %arg6[%c0_33, %c0_34, %c0_35], %89 {strides = array<i32>} : memref<1x8x128xf32, #tpu.memory_space<vmem>>, vector<1x8x128xf32>,
    return
  }
  func.func @transform_0(%arg0: i32, %arg1: i32) -> (i32, i32) {
    %c2_i32 = arith.constant 2 : i32
    %0 = arith.muli %arg0, %c2_i32 : i32
    %1 = arith.addi %0, %arg1 : i32
    %c2_i32_0 = arith.constant 2 : i32
    %2 = arith.minsi %1, %c2_i32_0 : i32
    %c0_i32 = arith.constant 0 : i32
    %c0_i32_1 = arith.constant 0 : i32
    return %2, %c0_i32 : i32, i32
  }
  func.func @transform_1(%arg0: i32, %arg1: i32) -> (i32, i32) {
    %c2_i32 = arith.constant 2 : i32
    %0 = arith.muli %arg0, %c2_i32 : i32
    %1 = arith.addi %0, %arg1 : i32
    %c2_i32_0 = arith.constant 2 : i32
    %2 = arith.minsi %1, %c2_i32_0 : i32
    %c0_i32 = arith.constant 0 : i32
    %c0_i32_1 = arith.constant 0 : i32
    return %2, %c0_i32 : i32, i32
  }
  func.func @transform_2(%arg0: i32, %arg1: i32) -> (i32, i32) {
    %c2_i32 = arith.constant 2 : i32
    %0 = arith.muli %arg0, %c2_i32 : i32
    %1 = arith.addi %0, %arg1 : i32
    %c2_i32_0 = arith.constant 2 : i32
    %2 = arith.minsi %1, %c2_i32_0 : i32
    %c0_i32 = arith.constant 0 : i32
    %c0_i32_1 = arith.constant 0 : i32
    return %2, %c0_i32 : i32, i32
  }
  func.func @transform_3(%arg0: i32, %arg1: i32) -> (i32, i32) {
    %c2_i32 = arith.constant 2 : i32
    %0 = arith.muli %arg0, %c2_i32 : i32
    %1 = arith.addi %0, %arg1 : i32
    %c2_i32_0 = arith.constant 2 : i32
    %2 = arith.minsi %1, %c2_i32_0 : i32
    %c0_i32 = arith.constant 0 : i32
    %c0_i32_1 = arith.constant 0 : i32
    return %2, %c0_i32 : i32, i32
  }
  func.func @transform_4(%arg0: i32, %arg1: i32) -> (i32, i32, i32) {
    %c0_i32 = arith.constant 0 : i32
    %c0_i32_0 = arith.constant 0 : i32
    %c0_i32_1 = arith.constant 0 : i32
    return %arg0, %c0_i32, %c0_i32_0 : i32, i32, i32
  }
}

</mosaic_0001>

<bundles_post_ra>
// kernel: tpu_custom_call.1
= control target key start
LH: loop header
LB: loop body
LE: loop exit
PB: predicated region body
PF: predicated region fallthrough
CT: control target
= control target key end

     0   :  { %s1359_s0 = inlined_call_operand.hbm [shape: f32[20,128], index: 0, kind: input, shape index: {}]   ;;  %s1360_s1 = inlined_call_operand.hbm [shape: f32[20,128], index: 1, kind: input, shape index: {}]   ;;  %s1361_s2 = inlined_call_operand.hbm [shape: f32[20,128], index: 2, kind: input, shape index: {}]   ;;  %s1362_s3 = inlined_call_operand.hbm [shape: f32[20,128], index: 3, kind: input, shape index: {}]   ;;  %s1363_s4 = inlined_call_operand.hbm [shape: f32[2,8,128], index: 4, kind: output, shape index: {}]  }
   0x1   :  { %1374 = sst [smem:[#allocation26_spill]] %s1359_s0 }
   0x2   :  { %1375 = sst [smem:[#allocation27_spill]] %s1360_s1 }
   0x3   :  { %9 = vsyncpa [#allocation3], 0 }
   0x4   :  { %11 = vsyncpa [#allocation3 + $0x1], 0 }
   0x5   :  { %12 = vsyncpa [#allocation6], 0 }
   0x6   :  { %14 = vsyncpa [#allocation6 + $0x1], 0 }
   0x7   :  { %15 = vsyncpa [#allocation9], 0 }
   0x8   :  { %17 = vsyncpa [#allocation9 + $0x1], 0 }
   0x9   :  { %18 = vsyncpa [#allocation4], 0 }
   0xa   :  { %20 = vsyncpa [#allocation4 + $0x1], 0  ;;  %s1114_s15 = smov 0   ;;  %s1116_s16 = smov 0  }
   0xb   :  { %s1118_s17 = smov 0   ;;  %s1120_s18 = smov 0  }
   0xc   :  { %s1122_s19 = smov 0   ;;  %s1124_s20 = smov 0  }
   0xd   :  { %s1126_s21 = smov 0   ;;  %s1128_s22 = smov 0  }
   0xe   :  { %s1130_s23 = smov 0   ;;  %s1132_s24 = smov 0  }
   0xf   :  { %s1134_s25 = smov 0  }
  0x10 LB: > { %1376 = sst [smem:[#allocation15_spill]] %s1045_s15  ;;  %s1170_s26 = sadd.s32 4294967295, %s1085_s25   ;;  %s1085_s25 = sphi %s1134_s25, %s26_s25   ;;  %s1081_s24 = sphi %s1132_s24, %s1405_s24   ;;  %s1077_s23 = sphi %s1130_s23, %s1404_s23   ;;  %s1073_s22 = sphi %s1128_s22, %s1403_s22   ;;  %s1069_s21 = sphi %s1126_s21, %s1402_s21   ;;  %s1065_s20 = sphi %s1124_s20, %s1401_s20   ;;  %s1061_s19 = sphi %s1122_s19, %s1409_s19   ;;  %s1057_s18 = sphi %s1120_s18, %s1408_s18   ;;  %s1053_s17 = sphi %s1118_s17, %s1399_s17   ;;  %s1049_s16 = sphi %s1116_s16, %s1407_s16   ;;  %s1045_s15 = sphi %s1114_s15, %s1406_s15  }
  0x11   : > { %1377 = sst [smem:[#allocation16_spill]] %s1053_s17  ;;  %s672_s27 = sadd.s32 4294967294, %s1085_s25  }
  0x12   : > { %1378 = sst [smem:[#allocation17_spill]] %s1065_s20  ;;  %s35_s28 = sadd.s32 1, %s1077_s23 }
  0x13   : > { %1379 = sst [smem:[#allocation18_spill]] %s1077_s23  ;;  %s38_s29 = sadd.s32 1, %s1081_s24 }
  0x14   : > { %1380 = sst [smem:[#allocation19_spill]] %s1081_s24  ;;  %p36_p0 = scmp.ge.s32.totalorder %s35_s28, 2 }
  0x15   : > { %1381 = sst [smem:[#allocation20_spill]] %s1085_s25  ;;  %s673_s30 = sshll.u32 %s1081_s24, 1 }
  0x16   : > { %s43_s5 = sadd.s32 %s1077_s23, %s673_s30  ;;  %s53_s6 = sadd.s32 1, %s1065_s20 }
  0x17   : > { %s1411_s28 = smov (%p36_p0, %s35_s28), 0  ;;  %s1413_s29 = smov (!%p36_p0, %s38_s29), %s1081_s24 }
  0x18   : > { %1382 = sst [smem:[#allocation21_spill]] %s1411_s28  ;;  %p44_p1 = scmp.lt.s32.totalorder %s43_s5, 2 }
  0x19   : > { %p60_p2 = scmp.ne.s32.totalorder %s1065_s20, %s1061_s19  ;;  %p40_p3 = scmp.ge.s32.totalorder %s1413_s29, 2 }
  0x1a   : > { %p61_p4 = scmp.eq.s32.totalorder %s1085_s25, 0  ;;  %s1415_s5 = smov (!%p44_p1, %s43_s5), 2 }
  0x1b   : > { %s1417_s29 = smov (%p40_p3, %s1413_s29), 0  ;;  %p66_p6 = scmp.ne.s32.totalorder %s1061_s19, %s1057_s18 }
  0x1c   : > { %1383 = sst [smem:[#allocation22_spill]] %s1417_s29  ;;  %p1186_p5 = por %p61_p4, %p60_p2 }
  0x1d   : > { %s674_s8 = sshll.u32 %s1417_s29, 1  ;;  %p67_p7 = scmp.eq.s32.totalorder %s1170_s26, 0 }
  0x1e   : > { %s47_s9 = sadd.s32 %s674_s8, %s1411_s28  ;;  %s178_s10 = ssub.s32 %s1081_s24, %s1417_s29 }
  0x1f   : > { %p48_p8 = scmp.lt.s32.totalorder %s47_s9, 2  ;;  %p1197_p9 = por %p67_p7, %p66_p6 }
  0x20   : > { %p179_p10 = scmp.eq.s32.totalorder %s178_s10, 0  ;;  %s181_s12 = sadd.s32 1, %s1053_s17 }
  0x21   : > { %s1419_s9 = smov (!%p48_p8, %s47_s9), 2  ;;  %p191_p11 = scmp.ne.s32.totalorder %s1053_s17, %s1049_s16 }
  0x22   : > { %s1203_s13 = scalar_select %p179_p10, %s1053_s17, %s181_s12  }
  0x23   : > { %s50_s14 = ssub.s32 %s1415_s5, %s1419_s9  ;;  %p192_p13 = scmp.eq.s32.totalorder %s1170_s26, 3 }
  0x24   : > { %1386 = sst [smem:[#allocation23_spill]] %s1203_s13  ;;  %p51_p12 = scmp.eq.s32.totalorder %s50_s14, 0 }
  0x25   : > { %p197_p0 = scmp.ne.s32.totalorder %s1049_s16, %s1045_s15  ;;  %p198_p1 = scmp.eq.s32.totalorder %s672_s27, 3 }
  0x26   : > { %s1213_s18 = scalar_select %p51_p12, %s1065_s20, %s53_s6  }
  0x27   : > { %p1215_p2 = por %p192_p13, %p191_p11  ;;  %p1219_p3 = por %p198_p1, %p197_p0 }
  0x28   : > { %1387 = sst [smem:[#allocation24_spill]] %s1213_s18  ;;  %p741_p4 = scmp.lt.s32.totalorder %s1085_s25, 4 }
  0x29   : > { %s1389_s8 = scalar_select %p1219_p3, 1, 0 }
  0x2a   : > { %s1225_s9 = sand.u32 1, %s1065_s20   ;;  %s1227_s10 = sshll.u32 %s1415_s5, 3 }
  0x2b   : > { %1390 = sst [smem:[#allocation25_spill]] %s1389_s8  ;;  %s1230_s27 = sshll.u32 %s1225_s9, 3 }
  0x2c   : > { %p1234_p6 = pnand %p741_p4, %p1186_p5  ;;  %s241_s12 = sand.u32 1, %s1085_s25  }
  0x2d   : > { %s1392_s1 = sld [smem:[#allocation27_spill]]  ;;  %s245_s24 = scalar_lea.vmem [#allocation5], %s1230_s27 }
  0x2e   : > { %s257_s5 = sshll.u32 %s245_s24, 4  ;;  %p695_p7 = scmp.ge.s32.totalorder %s1085_s25, 1  ;;  %s258_s5 = int_to_ptr.vmem [resolvable:$true] %s257_s5 }
  0x2f   : > { %s242_s7 = scalar_lea.sflag [#allocation6], %s241_s12  ;;  %p308_p5 = scmp.lt.s32.totalorder %s1085_s25, 5 }
  0x30   : > { %s1394_s0 = sld [smem:[#allocation26_spill]]  ;;  %s219_s12 = scalar_lea.sflag [#allocation3], %s1225_s9 }
  0x31   : > { %p1248_p8 = pnand %p695_p7, %p308_p5  ;;  %s276_s13 = scalar_lea.hbm %s1361_s2, %s1227_s10 }
  0x32   : > { %s268_s17 = scalar_lea.vmem [#allocation7], %s1230_s27  ;;  %s278_s29 = sshll.u32 %s276_s13, 4  ;;  %s279_s29 = int_to_ptr.hbm [resolvable:$true] %s278_s29 }
  0x33   : > { %s253_s28 = scalar_lea.hbm %s1392_s1, %s1227_s10  ;;  %s280_s8 = sshll.u32 %s268_s17, 4  ;;  %s281_s8 = int_to_ptr.vmem [resolvable:$true] %s280_s8 }
  0x34   : > { %s255_s23 = sshll.u32 %s253_s28, 4  ;;  %s222_s28 = scalar_lea.vmem [#allocation2], %s1230_s27  ;;  %s256_s23 = int_to_ptr.hbm [resolvable:$true] %s255_s23 }
  0x35   : > { %730 = dma.hbm_to_vmem [thread:$0]  (!%p1234_p6), %s256_s23, 128, %s258_s5, %s242_s7  }
  0x36   : > { %s230_s24 = scalar_lea.hbm %s1394_s0, %s1227_s10  ;;  %s234_s1 = sshll.u32 %s222_s28, 4  ;;  %s235_s1 = int_to_ptr.vmem [resolvable:$true] %s234_s1 }
  0x37   : > { %s232_s20 = sshll.u32 %s230_s24, 4  ;;  %s299_s28 = scalar_lea.hbm %s1362_s3, %s1227_s10  ;;  %s233_s20 = int_to_ptr.hbm [resolvable:$true] %s232_s20 }
  0x38   : > { %727 = dma.hbm_to_vmem [thread:$0]  (!%p1234_p6), %s233_s20, 128, %s235_s1, %s219_s12  }
  0x39   : > { %733 = dma.hbm_to_vmem [thread:$0]  (!%p1234_p6), %s279_s29, 128, %s281_s8, %s242_s7  }
  0x3a   : > { %s301_s0 = sshll.u32 %s299_s28, 4  ;;  %s291_s15 = scalar_lea.vmem [#allocation8], %s1230_s27  ;;  %s302_s0 = int_to_ptr.hbm [resolvable:$true] %s301_s0 }
  0x3b   : > { %s303_s25 = sshll.u32 %s291_s15, 4  ;;  %s288_s1 = scalar_lea.sflag [#allocation9], %s1225_s9  ;;  %s304_s25 = int_to_ptr.vmem [resolvable:$true] %s303_s25 }
  0x3c   : > { %736 = dma.hbm_to_vmem [thread:$0]  (!%p1234_p6), %s302_s0, 128, %s304_s25, %s288_s1  }
  0x3d   : > { %312 = sbr.rel (%p1248_p8) target bundleno = 417 (0x1a1), region = 36  ;;  %s314_s17 = sand.u32 (!%p1248_p8), 1, %s1061_s19  }
  0x3e   : > { %s696_s20 = sshll.u32 (!%p1248_p8), %s314_s17, 3  ;;  %s315_s13 = scalar_lea.sflag (!%p1248_p8), [#allocation3], %s314_s17 }
  0x3f   : > { %s318_s8 = scalar_lea.vmem (!%p1248_p8), [#allocation2], %s696_s20 }
  0x42   : > { %1028 = dma.done.wait (%p1197_p9), %s315_s13, 128  }
  0x43   : > { %1030 = vsyncadd (%p1197_p9), %s315_s13, 4294967168  ;;  %s324_s15 = sand.u32 1, %s1170_s26   ;;  %s328_s10 = scalar_lea.vmem [#allocation5], %s696_s20 }
  0x44   : > { %s325_s9 = scalar_lea.sflag [#allocation6], %s324_s15 }
  0x45   : > { %1032 = dma.done.wait (%p1197_p9), %s325_s9, 256  }
  0x46   : > { %1034 = vsyncadd (%p1197_p9), %s325_s9, 4294967040  ;;  %s338_s0 = scalar_lea.vmem [#allocation7], %s696_s20  ;;  %s345_s25 = scalar_lea.sflag [#allocation9], %s314_s17 }
  0x47   : > { %s348_s18 = scalar_lea.vmem [#allocation8], %s696_s20 }
  0x48   : > { %1036 = dma.done.wait (%p1197_p9), %s345_s25, 128  }
  0x49   : > { %1038 = vsyncadd (%p1197_p9), %s345_s25, 4294967168  ;;  %s386_s26 = sand.u32 1, %s1049_s16   ;;  %s701_s27 = sshll.u32 %s1073_s22, 1 }
  0x4a   : > { %s700_s6 = sshll.u32 %s386_s26, 3  ;;  %s1296_s7 = sadd.s32 %s1069_s21, %s701_s27 }
  0x4b   : > { %s1298_s12 = scalar_lea.vmem [#allocation10], %s700_s6  ;;  %p702_p10 = scmp.ne.s32.totalorder %s1069_s21, 0 }
  0x4d   : > { %410 = sbr.rel (%p702_p10) target bundleno = 84 (0x54), region = 56 }
  0x52   : > { %v1087_v0 = vmov 0.0  }
  0x53   : > { %411 = vst [vmem:[%s1298_s12] sm:$0xff] %v1087_v0 }
  0x54 PF: > { %v412_v1 = vld [vmem:[%s318_s8] sm:$0xff]  ;;  %v413_v2 = vld [vmem:[%s328_s10] sm:$0xff]  ;;  %v1088_v14 = vmov 128.0   ;;  %v442_v20 = vlaneseq  ;;  %s703_s21 = sshll.u32 %s1296_s7, 3  ;;  %vm458_vm2 = vcmask 7168   ;;  %s705_s23 = sshll.u32 %s1073_s22, 3 }
  0x55   : > { %v414_v3 = vld [vmem:[%s338_s0] sm:$0xff]  ;;  %v415_v4 = vld [vmem:[%s348_s18] sm:$0xff]  ;;  %v416_v5 = vsub.f32 %v412_v1, %v413_v2  ;;  %833 = vrcp.f32 %v1088_v14  ;;  %v444_v24 = vstv %s703_s21  ;;  %s519_s20 = scalar_lea.hbm %s1363_s4, %s705_s23  ;;  %s521_s22 = sshll.u32 %s1298_s12, 4  ;;  %s522_s22 = int_to_ptr.vmem [resolvable:$true] %s521_s22 }
  0x56   : > { %v433_v6 = vsub.f32 %v412_v1, %v414_v3  ;;  %v434_v7 = vsub.f32 %v413_v2, %v415_v4  ;;  %v428_v10 = vsub.f32 %v414_v3, %v415_v4  ;;  %v443_v23 = vshrl.u32 %v442_v20, 7  ;;  %s523_s13 = sshll.u32 %s519_s20, 4  ;;  %s509_s8 = scalar_lea.sflag [#allocation4], %s386_s26  ;;  %s524_s13 = int_to_ptr.hbm [resolvable:$true] %s523_s13 }
  0x57   : > { %v417_v8 = vmul.f32 %v416_v5, %v416_v5  ;;  %v493_v2 = vand.u32 127, %v442_v20  ;;  %s969_s15 = sshra.s32 %s524_s13, 4  ;;  %s975_s25 = scalar_lea.hbm %s1363_s4, 16  ;;  %s970_s15 = int_to_ptr.hbm [resolvable:$true] %s969_s15 }
  0x58   : > { %v435_v9 = vadd.f32 %v434_v7, %v433_v6  ;;  %v429_v13 = vmul.f32 %v428_v10, %v428_v10  ;;  %v445_v27 = vadd.s32 %v444_v24, %v443_v23  ;;  %s971_s9 = scalar_lea.hbm %s970_s15, 8  ;;  %p976_p13 = scmp.lt.s32.totalorder %s970_s15, %s1363_s4 }
  0x59   : > { %418 = vadd.xlane.f32.xlu0 %v417_v8  ;;  %vm497_vm3 = vcmp.eq.s32.totalorder %v493_v2, 3  ;;  %vm496_vm4 = vcmp.eq.s32.totalorder %v493_v2, 2  ;;  %vm495_vm5 = vcmp.eq.s32.totalorder %v493_v2, 1  ;;  %vm494_vm6 = vcmp.eq.s32.totalorder %v493_v2, 0  ;;  %p972_p9 = scmp.ne.s32.totalorder %s970_s15, %s971_s9  ;;  %p977_p0 = scmp.lt.s32.totalorder %s975_s25, %s971_s9 }
  0x5a   : > { %v436_v11 = vmul.f32 0.5, %v435_v9  ;;  %vm446_vm1 = vcmp.lt.s32.totalorder %v445_v27, 20  ;;  %v505_v8 = vld [vmem:[%s1298_s12] sm:$0xff] }
  0x5b   : > { %v834_v15 = vpop.eup %833  ;;  %p973_p11 = pnand %p972_p9, %p1215_p2  ;;  %p978_p1 = por %p977_p0, %p976_p13 }
  0x5c   : > { %v437_v12 = vmul.f32 %v436_v11, %v436_v11  ;;  %v421_v16 = vmul.f32 128.0, %v834_v15  ;;  %vm425_vm0 = vweird.f32 %v834_v15 }
  0x5d   : > { %p974_p12 = pneg %p973_p11 }
  0x5e   : > { %438 = vadd.xlane.f32.xlu1 %v437_v12  ;;  %v422_v17 = vsub.f32 1.0, %v421_v16 }
  0x5f   : > { %p979_p4 = pnand %p978_p1, %p974_p12 }
  0x60   : > { %v423_v18 = vmul.f32 %v834_v15, %v422_v17 }
  0x61   : > { %430 = vadd.xlane.f32.xlu0 %v429_v13 }
  0x62   : > { %v424_v19 = vadd.f32 %v834_v15, %v423_v18 }
  0x64   : > { %v426_v22 = vsel %vm425_vm0, %v834_v15, %v424_v19 }
  0xcc   : > { %v419_v21 = vpop.xlane.xlu0 %418 }
  0xcd   : > { %v427_v25 = vmul.f32 %v426_v22, %v419_v21 }
  0xcf   : > { %v447_v29 = vmax.f32 %v427_v25, 0.1 }
  0xd1   : > { %v439_v26 = vpop.xlane.xlu1 %438  ;;  %v448_v34 = vmul.f32 0.5, %v447_v29 }
  0xd2   : > { %v440_v31 = vmul.f32 %v439_v26, %v426_v22 }
  0xd4   : > { %v431_v28 = vpop.xlane.xlu0 %430  ;;  %v452_v36 = vmin.f32 %v440_v31, 1.0  ;;  %v457_v42 = vsel %vm446_vm1, %v440_v31, 0.0 }
  0xd5   : > { %v432_v30 = vmul.f32 %v431_v28, %v426_v22  ;;  %v481_v44 = vsel %vm458_vm2, %v457_v42, 0.0 }
  0xd7   : > { %v449_v32 = vmax.f32 %v432_v30, 0.1  ;;  %v455_v33 = vadd.f32 %v432_v30, %v427_v25 }
  0xd9   : > { %v450_v35 = vmul.f32 0.5, %v449_v32  ;;  %v456_v37 = vsel %vm446_vm1, %v455_v33, 0.0 }
  0xda   : > { %v470_v38 = vsel %vm458_vm2, %v456_v37, 0.0 }
  0xdb   : > { %v451_v39 = vadd.f32 %v450_v35, %v448_v34  ;;  %471 = vadd.xlane.f32.xlu2 %v470_v38 }
  0xdd   : > { %v453_v40 = vsub.f32 %v451_v39, %v452_v36 }
  0xdf   : > { %v454_v41 = vsel %vm446_vm1, %v453_v40, 0.0 }
  0xe0   : > { %v459_v43 = vsel %vm458_vm2, %v454_v41, 0.0 }
  0xe1   : > { %460 = vadd.xlane.f32.xlu1 %v459_v43 }
  0xe3   : > { %482 = vadd.xlane.f32.xlu2 %v481_v44 }
 0x14e   : > { %v472_v45 = vpop.xlane.xlu2 %471 }
 0x14f   : > { %v473_v46 = vrot.slane %v472_v45, 4 }
 0x151   : > { %v474_v47 = vadd.f32 %v473_v46, %v472_v45 }
 0x153   : > { %v475_v48 = vrot.slane %v474_v47, 2 }
 0x154   : > { %v461_v49 = vpop.xlane.xlu1 %460 }
 0x155   : > { %v462_v50 = vrot.slane %v461_v49, 4  ;;  %v476_v54 = vadd.f32 %v475_v48, %v474_v47 }
 0x156   : > { %v483_v51 = vpop.xlane.xlu2 %482 }
 0x157   : > { %v463_v52 = vadd.f32 %v462_v50, %v461_v49  ;;  %v484_v53 = vrot.slane %v483_v51, 4  ;;  %v477_v59 = vrot.slane %v476_v54, 1 }
 0x159   : > { %v464_v55 = vrot.slane %v463_v52, 2  ;;  %v485_v56 = vadd.f32 %v484_v53, %v483_v51  ;;  %v478_v0 = vadd.f32 %v477_v59, %v476_v54 }
 0x15b   : > { %v486_v57 = vrot.slane %v485_v56, 2  ;;  %v465_v58 = vadd.f32 %v464_v55, %v463_v52 }
 0x15d   : > { %v487_v60 = vadd.f32 %v486_v57, %v485_v56  ;;  %v466_v61 = vrot.slane %v465_v58, 1 }
 0x15f   : > { %v467_v62 = vadd.f32 %v466_v61, %v465_v58  ;;  %v488_v63 = vrot.slane %v487_v60, 1 }
 0x161   : > { %708 = vpush %v467_v62  ;;  %v489_v1 = vadd.f32 %v488_v63, %v487_v60 }
 0x162   : > { %710 = vpush %v478_v0 }
 0x163   : > { %712 = vpush %v489_v1 }
 0x192   : > { %s709_s11 = spop %708 }
 0x193   : > { %s469_s5 = smul.f32 0.05, %s709_s11  ;;  %s711_s29 = spop %710 }
 0x194   : > { %s480_s14 = smul.f32 0.025, %s711_s29  ;;  %s713_s24 = spop %712 }
 0x195   : > { %s491_s28 = smul.f32 0.05, %s713_s24  ;;  %v502_v6 = vstv %s469_s5 }
 0x196   : > { %v500_v4 = vstv %s480_s14 }
 0x197   : > { %v498_v3 = vstv %s491_s28 }
 0x198   : > { %v499_v5 = vsel %vm497_vm3, %v498_v3, 0.0 }
 0x199   : > { %v501_v7 = vsel %vm496_vm4, %v500_v4, %v499_v5 }
 0x19a   : > { %v503_v9 = vsel %vm495_vm5, %v502_v6, %v501_v7 }
 0x19b   : > { %v504_v10 = vsel %vm494_vm6, %v502_v6, %v503_v9 }
 0x19c   : > { %v506_v11 = vadd.f32 %v505_v8, %v504_v10 }
 0x19e   : > { %507 = vst [vmem:[%s1298_s12] sm:$0xff] %v506_v11 }
 0x19f   : > { %982 = shalt.err (!%p979_p4)
}
 0x1a0   : > { %722 = dma.vmem_to_hbm [thread:$0]  (%p1215_p2), %s522_s22, 128, %s524_s13, %s509_s8  }
 0x1a1 PF: > { %s1395_s26 = sld [smem:[#allocation20_spill]] }
 0x1a2   : > { %s1396_s6 = sld [smem:[#allocation15_spill]] }
 0x1a7   : > { %p742_p6 = scmp.ge.s32.totalorder %s1395_s26, 2 }
 0x1a8   : > { %s535_s12 = sand.u32 1, %s1396_s6  }
 0x1a9   : > { %p738_p7 = pnand %p742_p6, %p1219_p3  ;;  %s536_s21 = scalar_lea.sflag [#allocation4], %s535_s12 }
 0x1ab   : > { %p739_p5 = pneg %p738_p7 }
 0x1ad   : > { %1040 = dma.done.wait (%p739_p5), %s536_s21, 128  }
 0x1ae   : > { %1042 = vsyncadd (%p739_p5), %s536_s21, 4294967168  ;;  %s26_s25 = sadd.s32 1, %s1395_s26   ;;  %s1398_s11 = sld [smem:[#allocation16_spill]] }
 0x1af   : > { %p23_p8 = scmp.ge.s32.totalorder %s26_s25, 6   ;;  %s1399_s17 = sld [smem:[#allocation23_spill]] }
 0x1b0   : > { %s1400_s30 = sld [smem:[#allocation17_spill]]  ;;  %s1406_s15 = smov %s1049_s16 }
 0x1b1   : > { %s1401_s20 = sld [smem:[#allocation24_spill]]  ;;  %s1408_s18 = smov %s1061_s19 }
 0x1b2   : > { %s1402_s21 = sld [smem:[#allocation18_spill]]  ;;  %25 = sbr.rel (!%p23_p8) target bundleno = 16 (0x10), region = 122 }
 0x1b3   : > { %s1403_s22 = sld [smem:[#allocation19_spill]] }
 0x1b4   : > { %s1404_s23 = sld [smem:[#allocation21_spill]]  ;;  %s1407_s16 = smov %s1398_s11 }
 0x1b5   : > { %s1405_s24 = sld [smem:[#allocation22_spill]] }
 0x1b6   : > { %s1409_s19 = smov %s1400_s30 }
 0x1b7   :  { %542 = vsyncpa [#allocation3], 1 }
 0x1b8   :  { %544 = vsyncpa [#allocation3 + $0x1], 1 }
 0x1b9   :  { %545 = vsyncpa [#allocation6], 1 }
 0x1ba   :  { %547 = vsyncpa [#allocation6 + $0x1], 1 }
 0x1bb   :  { %548 = vsyncpa [#allocation9], 1 }
 0x1bc   :  { %550 = vsyncpa [#allocation9 + $0x1], 1 }
 0x1bd   :  { %551 = vsyncpa [#allocation4], 1 }
 0x1be   :  { %553 = vsyncpa [#allocation4 + $0x1], 1 }

</bundles_post_ra>
